<compile_context>
chip_gen: v6e
topology: v6e:2x2x1
jax: 0.10.0
libtpu: 0.0.40
codegen_flags: <defaults>
</compile_context>

<pallas_src>
import functools
import math

import jax
import jax.numpy as jnp
from jax.experimental import pallas as pl
from jax.experimental.pallas import tpu as pltpu


def _round_up(x, m):
    return (x + m - 1) // m * m


# --------------------------------------------------------------------------
# Kernels
# --------------------------------------------------------------------------
def _spatial_tap_kernel(x_ref, w_ref, b_ref, o_ref, acc_ref, *, shifts, rows_out):
    """Per-frame spatial conv.

    x_ref:   (Cin, rows_in)    bf16, flattened zero-padded frame (+ tail pad)
    w_ref:   (k*k, Cout, Cin)  bf16, one (Cout, Cin) matrix per tap
    b_ref:   (Cout, 1)         f32
    o_ref:   (Cout, rows_out)  output dtype
    acc_ref: (Cout, rows_out)  f32 VMEM scratch accumulator
    """
    sh0 = shifts[0]
    acc_ref[...] = jnp.dot(w_ref[0], x_ref[:, sh0:sh0 + rows_out],
                           preferred_element_type=jnp.float32)
    for t in range(1, len(shifts)):
        sh = shifts[t]
        acc_ref[...] += jnp.dot(w_ref[t], x_ref[:, sh:sh + rows_out],
                                preferred_element_type=jnp.float32)
    o_ref[...] = (acc_ref[...] + b_ref[...]).astype(o_ref.dtype)


def _temporal_tap_kernel(x_ref, w_ref, b_ref, o_ref, acc_ref, *, n_taps, t_out):
    """Temporal conv on one spatial tile (no halo needed).

    x_ref:   (Tp, Cin, TS)   bf16
    w_ref:   (k, Cout, Cin)  bf16
    b_ref:   (Cout, 1)       f32
    o_ref:   (To, Cout, TS)  output dtype
    acc_ref: (Cout, TS)      f32 VMEM scratch accumulator
    """
    for t in range(t_out):
        acc_ref[...] = jnp.dot(w_ref[0], x_ref[t],
                               preferred_element_type=jnp.float32)
        for dt in range(1, n_taps):
            acc_ref[...] += jnp.dot(w_ref[dt], x_ref[t + dt],
                                    preferred_element_type=jnp.float32)
        o_ref[t] = (acc_ref[...] + b_ref[...]).astype(o_ref.dtype)


# --------------------------------------------------------------------------
# Module
# --------------------------------------------------------------------------
class PseudoConv3d:
    """JAX/Pallas re-implementation of the PyTorch PseudoConv3d module."""

    def __init__(self, ndim, in_channels, out_channels, kernel_size,
                 padding=0, identity_init=False, *, key):
        if ndim not in (1, 2):
            raise NotImplementedError(f"ndim={ndim} not supported")
        self.ndim = ndim
        self.in_channels = in_channels
        self.out_channels = out_channels
        self.kernel_size = kernel_size
        self.padding = padding

        if ndim == 1:
            shape = (out_channels, in_channels, kernel_size)
        else:
            shape = (out_channels, in_channels, kernel_size, kernel_size)

        if identity_init:
            # nn.init.dirac_
            w = jnp.zeros(shape, jnp.float32)
            d = jnp.arange(min(out_channels, in_channels))
            if ndim == 1:
                w = w.at[d, d, kernel_size // 2].set(1.0)
            else:
                w = w.at[d, d, kernel_size // 2, kernel_size // 2].set(1.0)
        else:
            # nn.init.kaiming_uniform_ (a=0, fan_in, leaky_relu) -> U(+-sqrt(6/fan_in))
            fan_in = in_channels * (kernel_size if ndim == 1 else kernel_size ** 2)
            bound = math.sqrt(6.0 / fan_in)
            w = jax.random.uniform(key, shape, jnp.float32, -bound, bound)

        self.weight = w
        self.bias = jnp.zeros((out_channels,), jnp.float32)

    # ---- ndim == 2: per-frame spatial conv ------------------------------
    def _spatial_forward(self, x):
        N, C, T, H, W = x.shape
        k, p, Co = self.kernel_size, self.padding, self.out_channels
        Hp, Wp = H + 2 * p, W + 2 * p
        Ho, Wo = Hp - k + 1, Wp - k + 1
        rows_out = Ho * Wp                          # over-wide; wrap cols cropped in glue
        max_shift = (k - 1) * (Wp + 1)
        rows_in = _round_up(rows_out + max_shift, 128)   # every tap slice in bounds

        # NCDHW -> (N*T, Cin, flat padded spatial), bf16
        xp = jnp.pad(x, ((0, 0), (0, 0), (0, 0), (p, p), (p, p)))
        xt = jnp.transpose(xp, (0, 2, 1, 3, 4)).reshape(N * T, C, Hp * Wp)
        xt = jnp.pad(xt, ((0, 0), (0, 0), (0, rows_in - Hp * Wp)))
        xt = xt.astype(jnp.bfloat16)

        w_taps = jnp.transpose(self.weight, (2, 3, 0, 1)).reshape(k * k, Co, C)
        w_taps = w_taps.astype(jnp.bfloat16)
        bias = self.bias.reshape(Co, 1)

        shifts = tuple(dy * Wp + dx for dy in range(k) for dx in range(k))
        out_dt = x.dtype
        out_isz = jnp.dtype(out_dt).itemsize
        vmem = (2 * (C * rows_in * 2 + Co * rows_out * out_isz)
                + Co * rows_out * 4 + 2 * (k * k * Co * C * 2) + (4 << 20))

        kern = functools.partial(_spatial_tap_kernel,
                                 shifts=shifts, rows_out=rows_out)
        out = pl.pallas_call(
            kern,
            out_shape=jax.ShapeDtypeStruct((N * T, Co, rows_out), out_dt),
            grid=(N * T,),
            in_specs=[
                pl.BlockSpec((None, C, rows_in), lambda i: (i, 0, 0)),
                pl.BlockSpec((k * k, Co, C), lambda i: (0, 0, 0)),
                pl.BlockSpec((Co, 1), lambda i: (0, 0)),
            ],
            out_specs=pl.BlockSpec((None, Co, rows_out), lambda i: (i, 0, 0)),
            scratch_shapes=[pltpu.VMEM((Co, rows_out), jnp.float32)],
            compiler_params=pltpu.CompilerParams(
                dimension_semantics=("parallel",),
                vmem_limit_bytes=int(max(32 << 20, vmem))),
        )(xt, w_taps, bias)

        out = out.reshape(N, T, Co, Ho, Wp)[:, :, :, :, :Wo]
        return jnp.transpose(out, (0, 2, 1, 3, 4))          # (N, Cout, T, Ho, Wo)

    # ---- ndim == 1: temporal conv ---------------------------------------
    def _temporal_forward(self, x):
        N, C, T, H, W = x.shape
        k, p, Co = self.kernel_size, self.padding, self.out_channels
        Tp = T + 2 * p
        To = Tp - k + 1
        S = H * W
        out_dt = x.dtype
        out_isz = jnp.dtype(out_dt).itemsize

        # pick the spatial tile: as large as possible (lane-dense, fewer grid
        # steps) while double-buffered in+out blocks fit a ~20 MiB budget
        # (leaves headroom on v7x's 64 MiB VMEM; v5e default is only 16 MiB,
        # so vmem_limit_bytes is raised explicitly below).
        per_lane = 2 * (Tp * C * 2 + To * Co * out_isz) + Co * 4
        ts = min(512, _round_up(S, 128))
        while ts > 128 and per_lane * ts > (20 << 20):
            ts -= 128
        S_pad = _round_up(S, ts)

        # NCDHW -> (N, Tp, Cin, S_pad), bf16
        xt = jnp.transpose(x.reshape(N, C, T, S), (0, 2, 1, 3))
        xt = jnp.pad(xt, ((0, 0), (p, p), (0, 0), (0, S_pad - S)))
        xt = xt.astype(jnp.bfloat16)

        w_taps = jnp.transpose(self.weight, (2, 0, 1)).astype(jnp.bfloat16)   # (k, Co, Ci)
        bias = self.bias.reshape(Co, 1)

        vmem = per_lane * ts + 2 * (k * Co * C * 2) + (4 << 20)
        kern = functools.partial(_temporal_tap_kernel, n_taps=k, t_out=To)
        out = pl.pallas_call(
            kern,
            out_shape=jax.ShapeDtypeStruct((N, To, Co, S_pad), out_dt),
            grid=(N, S_pad // ts),
            in_specs=[
                pl.BlockSpec((None, Tp, C, ts), lambda n, s: (n, 0, 0, s)),
                pl.BlockSpec((k, Co, C), lambda n, s: (0, 0, 0)),
                pl.BlockSpec((Co, 1), lambda n, s: (0, 0)),
            ],
            out_specs=pl.BlockSpec((None, To, Co, ts), lambda n, s: (n, 0, 0, s)),
            scratch_shapes=[pltpu.VMEM((Co, ts), jnp.float32)],
            compiler_params=pltpu.CompilerParams(
                dimension_semantics=("parallel", "parallel"),
                vmem_limit_bytes=int(max(32 << 20, vmem))),
        )(xt, w_taps, bias)

        out = out[:, :, :, :S]
        out = jnp.transpose(out, (0, 2, 1, 3)).reshape(N, Co, To, H, W)
        return out                                            # (N, Cout, To, H, W)

    # ---- forward ---------------------------------------------------------
    def __call__(self, x, focus_present_mask_only=False):
        N, C, T, H, W = x.shape
        assert C == self.in_channels
        if self.ndim == 1:
            if focus_present_mask_only:
                return x
            return self._temporal_forward(x)
        return self._spatial_forward(x)


# --------------------------------------------------------------------------
# Pure-JAX reference mirroring F.conv3d semantics (on bf16-rounded operands,
# matching the kernel's bf16-input / f32-accumulate numerics).
# --------------------------------------------------------------------------
def _torch_style_reference(x, module):
    xr = x.astype(jnp.bfloat16).astype(jnp.float32)
    wr = module.weight.astype(jnp.bfloat16).astype(jnp.float32)
    if module.ndim == 1:
        w5 = wr[:, :, :, None, None]                          # (Co,Ci,k,1,1)
        pad = (module.padding, 0, 0)
    else:
        w5 = wr[:, :, None, :, :]                             # (Co,Ci,1,k,k)
        pad = (0, module.padding, module.padding)
    out = jax.lax.conv_general_dilated(
        xr, w5, window_strides=(1, 1, 1),
        padding=[(pad[0], pad[0]), (pad[1], pad[1]), (pad[2], pad[2])],
        dimension_numbers=("NCDHW", "OIDHW", "NCDHW"),
        precision=jax.lax.Precision.HIGHEST)
    return out + module.bias[None, :, None, None, None]


if __name__ == "__main__":
    key = jax.random.PRNGKey(0)
    kx, k2, k1 = jax.random.split(key, 3)

    N, Cin, T, H, W = 2, 4, 8, 16, 16
    Cout, K, P = 8, 3, 1
    x = jax.random.normal(kx, (N, Cin, T, H, W), jnp.float32)

    # ndim = 2: per-frame spatial conv
    conv2 = PseudoConv3d(2, Cin, Cout, K, padding=P, key=k2)
    y2 = jax.block_until_ready(conv2(x))
    assert y2.shape == (N, Cout, T, H, W)
    r2 = _torch_style_reference(x, conv2)
    assert jnp.allclose(y2, r2, atol=2e-3, rtol=2e-3), \
        float(jnp.max(jnp.abs(y2 - r2)))

    # ndim = 1: temporal conv
    conv1 = PseudoConv3d(1, Cin, Cout, K, padding=P, key=k1)
    y1 = jax.block_until_ready(conv1(x))
    assert y1.shape == (N, Cout, T, H, W)
    r1 = _torch_style_reference(x, conv1)
    assert jnp.allclose(y1, r1, atol=2e-3, rtol=2e-3), \
        float(jnp.max(jnp.abs(y1 - r1)))

    # focus_present_mask_only short-circuit (only active for ndim == 1)
    y_id = jax.block_until_ready(conv1(x, focus_present_mask_only=True))
    assert jnp.array_equal(y_id, x)

    print("KERNEL_OK")
</pallas_src>

<mosaic_0001>
module attributes {stable_mosaic.version = 11 : i64} {
  func.func @_spatial_tap_kernel(%arg0: i32, %arg1: memref<1x4x384xbf16, #tpu.memory_space<vmem>>, %arg2: memref<9x8x4xbf16, #tpu.memory_space<vmem>>, %arg3: memref<8x1xf32, #tpu.memory_space<vmem>>, %arg4: memref<1x8x288xf32, #tpu.memory_space<vmem>>, %arg5: memref<8x288xf32, #tpu.memory_space<vmem>>) attributes {dimension_semantics = [#tpu.dimension_semantics<parallel>], iteration_bounds = array<i64: 16>, scalar_prefetch = 0 : i64, scratch_operands = 1 : i64, tpu.core_type = #tpu.core_type<tc>, window_params = [{transform_indices = @transform_0, window_bounds = array<i64: 1, 4, 384>}, {pipeline_mode = #tpu.pipeline_mode<synchronous>, transform_indices = @transform_1, window_bounds = array<i64: 9, 8, 4>}, {pipeline_mode = #tpu.pipeline_mode<synchronous>, transform_indices = @transform_2, window_bounds = array<i64: 8, 1>}, {transform_indices = @transform_3, window_bounds = array<i64: 1, 8, 288>}]} {
    %c0 = arith.constant 0 : index
    %c0_0 = arith.constant 0 : index
    %c0_1 = arith.constant 0 : index
    %0 = vector.load %arg2[%c0, %c0_0, %c0_1] : memref<9x8x4xbf16, #tpu.memory_space<vmem>>, vector<1x8x4xbf16>
    %1 = vector.shape_cast %0 : vector<1x8x4xbf16> to vector<8x4xbf16>
    %c0_2 = arith.constant 0 : index
    %c0_3 = arith.constant 0 : index
    %c0_4 = arith.constant 0 : index
    %2 = vector.load %arg1[%c0_2, %c0_3, %c0_4] : memref<1x4x384xbf16, #tpu.memory_space<vmem>>, vector<1x4x288xbf16>
    %3 = vector.shape_cast %2 : vector<1x4x288xbf16> to vector<4x288xbf16>
    %cst = arith.constant dense<0.000000e+00> : vector<8x288xf32>
    %4 = tpu.matmul %1, %3, %cst {dimension_numbers = #tpu.dot_dimension_numbers<[1], [0], [0], [1], [0, 0, 1, 1], [], []>} : vector<8x4xbf16>, vector<4x288xbf16>, vector<8x288xf32> -> vector<8x288xf32>
    %c0_5 = arith.constant 0 : index
    %c0_6 = arith.constant 0 : index
    %5 = vector.load %arg5[%c0_5, %c0_6] : memref<8x288xf32, #tpu.memory_space<vmem>>, vector<8x288xf32>
    tpu.vector_store %arg5[%c0_5, %c0_6], %4 {strides = array<i32>} : memref<8x288xf32, #tpu.memory_space<vmem>>, vector<8x288xf32>,
    %c0_7 = arith.constant 0 : index
    %c0_8 = arith.constant 0 : index
    %6 = vector.load %arg5[%c0_7, %c0_8] : memref<8x288xf32, #tpu.memory_space<vmem>>, vector<8x288xf32>
    %c1 = arith.constant 1 : index
    %c0_9 = arith.constant 0 : index
    %c0_10 = arith.constant 0 : index
    %7 = vector.load %arg2[%c1, %c0_9, %c0_10] : memref<9x8x4xbf16, #tpu.memory_space<vmem>>, vector<1x8x4xbf16>
    %8 = vector.shape_cast %7 : vector<1x8x4xbf16> to vector<8x4xbf16>
    %c0_11 = arith.constant 0 : index
    %c0_12 = arith.constant 0 : index
    %c1_13 = arith.constant 1 : index
    %9 = vector.load %arg1[%c0_11, %c0_12, %c1_13] : memref<1x4x384xbf16, #tpu.memory_space<vmem>>, vector<1x4x288xbf16>
    %10 = vector.shape_cast %9 : vector<1x4x288xbf16> to vector<4x288xbf16>
    %cst_14 = arith.constant dense<0.000000e+00> : vector<8x288xf32>
    %11 = tpu.matmul %8, %10, %cst_14 {dimension_numbers = #tpu.dot_dimension_numbers<[1], [0], [0], [1], [0, 0, 1, 1], [], []>} : vector<8x4xbf16>, vector<4x288xbf16>, vector<8x288xf32> -> vector<8x288xf32>
    %12 = arith.addf %6, %11 : vector<8x288xf32>
    %c0_15 = arith.constant 0 : index
    %c0_16 = arith.constant 0 : index
    %13 = vector.load %arg5[%c0_15, %c0_16] : memref<8x288xf32, #tpu.memory_space<vmem>>, vector<8x288xf32>
    tpu.vector_store %arg5[%c0_15, %c0_16], %12 {strides = array<i32>} : memref<8x288xf32, #tpu.memory_space<vmem>>, vector<8x288xf32>,
    %c0_17 = arith.constant 0 : index
    %c0_18 = arith.constant 0 : index
    %14 = vector.load %arg5[%c0_17, %c0_18] : memref<8x288xf32, #tpu.memory_space<vmem>>, vector<8x288xf32>
    %c2 = arith.constant 2 : index
    %c0_19 = arith.constant 0 : index
    %c0_20 = arith.constant 0 : index
    %15 = vector.load %arg2[%c2, %c0_19, %c0_20] : memref<9x8x4xbf16, #tpu.memory_space<vmem>>, vector<1x8x4xbf16>
    %16 = vector.shape_cast %15 : vector<1x8x4xbf16> to vector<8x4xbf16>
    %c0_21 = arith.constant 0 : index
    %c0_22 = arith.constant 0 : index
    %c2_23 = arith.constant 2 : index
    %17 = vector.load %arg1[%c0_21, %c0_22, %c2_23] : memref<1x4x384xbf16, #tpu.memory_space<vmem>>, vector<1x4x288xbf16>
    %18 = vector.shape_cast %17 : vector<1x4x288xbf16> to vector<4x288xbf16>
    %cst_24 = arith.constant dense<0.000000e+00> : vector<8x288xf32>
    %19 = tpu.matmul %16, %18, %cst_24 {dimension_numbers = #tpu.dot_dimension_numbers<[1], [0], [0], [1], [0, 0, 1, 1], [], []>} : vector<8x4xbf16>, vector<4x288xbf16>, vector<8x288xf32> -> vector<8x288xf32>
    %20 = arith.addf %14, %19 : vector<8x288xf32>
    %c0_25 = arith.constant 0 : index
    %c0_26 = arith.constant 0 : index
    %21 = vector.load %arg5[%c0_25, %c0_26] : memref<8x288xf32, #tpu.memory_space<vmem>>, vector<8x288xf32>
    tpu.vector_store %arg5[%c0_25, %c0_26], %20 {strides = array<i32>} : memref<8x288xf32, #tpu.memory_space<vmem>>, vector<8x288xf32>,
    %c0_27 = arith.constant 0 : index
    %c0_28 = arith.constant 0 : index
    %22 = vector.load %arg5[%c0_27, %c0_28] : memref<8x288xf32, #tpu.memory_space<vmem>>, vector<8x288xf32>
    %c3 = arith.constant 3 : index
    %c0_29 = arith.constant 0 : index
    %c0_30 = arith.constant 0 : index
    %23 = vector.load %arg2[%c3, %c0_29, %c0_30] : memref<9x8x4xbf16, #tpu.memory_space<vmem>>, vector<1x8x4xbf16>
    %24 = vector.shape_cast %23 : vector<1x8x4xbf16> to vector<8x4xbf16>
    %c0_31 = arith.constant 0 : index
    %c0_32 = arith.constant 0 : index
    %c18 = arith.constant 18 : index
    %25 = vector.load %arg1[%c0_31, %c0_32, %c18] : memref<1x4x384xbf16, #tpu.memory_space<vmem>>, vector<1x4x288xbf16>
    %26 = vector.shape_cast %25 : vector<1x4x288xbf16> to vector<4x288xbf16>
    %cst_33 = arith.constant dense<0.000000e+00> : vector<8x288xf32>
    %27 = tpu.matmul %24, %26, %cst_33 {dimension_numbers = #tpu.dot_dimension_numbers<[1], [0], [0], [1], [0, 0, 1, 1], [], []>} : vector<8x4xbf16>, vector<4x288xbf16>, vector<8x288xf32> -> vector<8x288xf32>
    %28 = arith.addf %22, %27 : vector<8x288xf32>
    %c0_34 = arith.constant 0 : index
    %c0_35 = arith.constant 0 : index
    %29 = vector.load %arg5[%c0_34, %c0_35] : memref<8x288xf32, #tpu.memory_space<vmem>>, vector<8x288xf32>
    tpu.vector_store %arg5[%c0_34, %c0_35], %28 {strides = array<i32>} : memref<8x288xf32, #tpu.memory_space<vmem>>, vector<8x288xf32>,
    %c0_36 = arith.constant 0 : index
    %c0_37 = arith.constant 0 : index
    %30 = vector.load %arg5[%c0_36, %c0_37] : memref<8x288xf32, #tpu.memory_space<vmem>>, vector<8x288xf32>
    %c4 = arith.constant 4 : index
    %c0_38 = arith.constant 0 : index
    %c0_39 = arith.constant 0 : index
    %31 = vector.load %arg2[%c4, %c0_38, %c0_39] : memref<9x8x4xbf16, #tpu.memory_space<vmem>>, vector<1x8x4xbf16>
    %32 = vector.shape_cast %31 : vector<1x8x4xbf16> to vector<8x4xbf16>
    %c0_40 = arith.constant 0 : index
    %c0_41 = arith.constant 0 : index
    %c19 = arith.constant 19 : index
    %33 = vector.load %arg1[%c0_40, %c0_41, %c19] : memref<1x4x384xbf16, #tpu.memory_space<vmem>>, vector<1x4x288xbf16>
    %34 = vector.shape_cast %33 : vector<1x4x288xbf16> to vector<4x288xbf16>
    %cst_42 = arith.constant dense<0.000000e+00> : vector<8x288xf32>
    %35 = tpu.matmul %32, %34, %cst_42 {dimension_numbers = #tpu.dot_dimension_numbers<[1], [0], [0], [1], [0, 0, 1, 1], [], []>} : vector<8x4xbf16>, vector<4x288xbf16>, vector<8x288xf32> -> vector<8x288xf32>
    %36 = arith.addf %30, %35 : vector<8x288xf32>
    %c0_43 = arith.constant 0 : index
    %c0_44 = arith.constant 0 : index
    %37 = vector.load %arg5[%c0_43, %c0_44] : memref<8x288xf32, #tpu.memory_space<vmem>>, vector<8x288xf32>
    tpu.vector_store %arg5[%c0_43, %c0_44], %36 {strides = array<i32>} : memref<8x288xf32, #tpu.memory_space<vmem>>, vector<8x288xf32>,
    %c0_45 = arith.constant 0 : index
    %c0_46 = arith.constant 0 : index
    %38 = vector.load %arg5[%c0_45, %c0_46] : memref<8x288xf32, #tpu.memory_space<vmem>>, vector<8x288xf32>
    %c5 = arith.constant 5 : index
    %c0_47 = arith.constant 0 : index
    %c0_48 = arith.constant 0 : index
    %39 = vector.load %arg2[%c5, %c0_47, %c0_48] : memref<9x8x4xbf16, #tpu.memory_space<vmem>>, vector<1x8x4xbf16>
    %40 = vector.shape_cast %39 : vector<1x8x4xbf16> to vector<8x4xbf16>
    %c0_49 = arith.constant 0 : index
    %c0_50 = arith.constant 0 : index
    %c20 = arith.constant 20 : index
    %41 = vector.load %arg1[%c0_49, %c0_50, %c20] : memref<1x4x384xbf16, #tpu.memory_space<vmem>>, vector<1x4x288xbf16>
    %42 = vector.shape_cast %41 : vector<1x4x288xbf16> to vector<4x288xbf16>
    %cst_51 = arith.constant dense<0.000000e+00> : vector<8x288xf32>
    %43 = tpu.matmul %40, %42, %cst_51 {dimension_numbers = #tpu.dot_dimension_numbers<[1], [0], [0], [1], [0, 0, 1, 1], [], []>} : vector<8x4xbf16>, vector<4x288xbf16>, vector<8x288xf32> -> vector<8x288xf32>
    %44 = arith.addf %38, %43 : vector<8x288xf32>
    %c0_52 = arith.constant 0 : index
    %c0_53 = arith.constant 0 : index
    %45 = vector.load %arg5[%c0_52, %c0_53] : memref<8x288xf32, #tpu.memory_space<vmem>>, vector<8x288xf32>
    tpu.vector_store %arg5[%c0_52, %c0_53], %44 {strides = array<i32>} : memref<8x288xf32, #tpu.memory_space<vmem>>, vector<8x288xf32>,
    %c0_54 = arith.constant 0 : index
    %c0_55 = arith.constant 0 : index
    %46 = vector.load %arg5[%c0_54, %c0_55] : memref<8x288xf32, #tpu.memory_space<vmem>>, vector<8x288xf32>
    %c6 = arith.constant 6 : index
    %c0_56 = arith.constant 0 : index
    %c0_57 = arith.constant 0 : index
    %47 = vector.load %arg2[%c6, %c0_56, %c0_57] : memref<9x8x4xbf16, #tpu.memory_space<vmem>>, vector<1x8x4xbf16>
    %48 = vector.shape_cast %47 : vector<1x8x4xbf16> to vector<8x4xbf16>
    %c0_58 = arith.constant 0 : index
    %c0_59 = arith.constant 0 : index
    %c36 = arith.constant 36 : index
    %49 = vector.load %arg1[%c0_58, %c0_59, %c36] : memref<1x4x384xbf16, #tpu.memory_space<vmem>>, vector<1x4x288xbf16>
    %50 = vector.shape_cast %49 : vector<1x4x288xbf16> to vector<4x288xbf16>
    %cst_60 = arith.constant dense<0.000000e+00> : vector<8x288xf32>
    %51 = tpu.matmul %48, %50, %cst_60 {dimension_numbers = #tpu.dot_dimension_numbers<[1], [0], [0], [1], [0, 0, 1, 1], [], []>} : vector<8x4xbf16>, vector<4x288xbf16>, vector<8x288xf32> -> vector<8x288xf32>
    %52 = arith.addf %46, %51 : vector<8x288xf32>
    %c0_61 = arith.constant 0 : index
    %c0_62 = arith.constant 0 : index
    %53 = vector.load %arg5[%c0_61, %c0_62] : memref<8x288xf32, #tpu.memory_space<vmem>>, vector<8x288xf32>
    tpu.vector_store %arg5[%c0_61, %c0_62], %52 {strides = array<i32>} : memref<8x288xf32, #tpu.memory_space<vmem>>, vector<8x288xf32>,
    %c0_63 = arith.constant 0 : index
    %c0_64 = arith.constant 0 : index
    %54 = vector.load %arg5[%c0_63, %c0_64] : memref<8x288xf32, #tpu.memory_space<vmem>>, vector<8x288xf32>
    %c7 = arith.constant 7 : index
    %c0_65 = arith.constant 0 : index
    %c0_66 = arith.constant 0 : index
    %55 = vector.load %arg2[%c7, %c0_65, %c0_66] : memref<9x8x4xbf16, #tpu.memory_space<vmem>>, vector<1x8x4xbf16>
    %56 = vector.shape_cast %55 : vector<1x8x4xbf16> to vector<8x4xbf16>
    %c0_67 = arith.constant 0 : index
    %c0_68 = arith.constant 0 : index
    %c37 = arith.constant 37 : index
    %57 = vector.load %arg1[%c0_67, %c0_68, %c37] : memref<1x4x384xbf16, #tpu.memory_space<vmem>>, vector<1x4x288xbf16>
    %58 = vector.shape_cast %57 : vector<1x4x288xbf16> to vector<4x288xbf16>
    %cst_69 = arith.constant dense<0.000000e+00> : vector<8x288xf32>
    %59 = tpu.matmul %56, %58, %cst_69 {dimension_numbers = #tpu.dot_dimension_numbers<[1], [0], [0], [1], [0, 0, 1, 1], [], []>} : vector<8x4xbf16>, vector<4x288xbf16>, vector<8x288xf32> -> vector<8x288xf32>
    %60 = arith.addf %54, %59 : vector<8x288xf32>
    %c0_70 = arith.constant 0 : index
    %c0_71 = arith.constant 0 : index
    %61 = vector.load %arg5[%c0_70, %c0_71] : memref<8x288xf32, #tpu.memory_space<vmem>>, vector<8x288xf32>
    tpu.vector_store %arg5[%c0_70, %c0_71], %60 {strides = array<i32>} : memref<8x288xf32, #tpu.memory_space<vmem>>, vector<8x288xf32>,
    %c0_72 = arith.constant 0 : index
    %c0_73 = arith.constant 0 : index
    %62 = vector.load %arg5[%c0_72, %c0_73] : memref<8x288xf32, #tpu.memory_space<vmem>>, vector<8x288xf32>
    %c8 = arith.constant 8 : index
    %c0_74 = arith.constant 0 : index
    %c0_75 = arith.constant 0 : index
    %63 = vector.load %arg2[%c8, %c0_74, %c0_75] : memref<9x8x4xbf16, #tpu.memory_space<vmem>>, vector<1x8x4xbf16>
    %64 = vector.shape_cast %63 : vector<1x8x4xbf16> to vector<8x4xbf16>
    %c0_76 = arith.constant 0 : index
    %c0_77 = arith.constant 0 : index
    %c38 = arith.constant 38 : index
    %65 = vector.load %arg1[%c0_76, %c0_77, %c38] : memref<1x4x384xbf16, #tpu.memory_space<vmem>>, vector<1x4x288xbf16>
    %66 = vector.shape_cast %65 : vector<1x4x288xbf16> to vector<4x288xbf16>
    %cst_78 = arith.constant dense<0.000000e+00> : vector<8x288xf32>
    %67 = tpu.matmul %64, %66, %cst_78 {dimension_numbers = #tpu.dot_dimension_numbers<[1], [0], [0], [1], [0, 0, 1, 1], [], []>} : vector<8x4xbf16>, vector<4x288xbf16>, vector<8x288xf32> -> vector<8x288xf32>
    %68 = arith.addf %62, %67 : vector<8x288xf32>
    %c0_79 = arith.constant 0 : index
    %c0_80 = arith.constant 0 : index
    %69 = vector.load %arg5[%c0_79, %c0_80] : memref<8x288xf32, #tpu.memory_space<vmem>>, vector<8x288xf32>
    tpu.vector_store %arg5[%c0_79, %c0_80], %68 {strides = array<i32>} : memref<8x288xf32, #tpu.memory_space<vmem>>, vector<8x288xf32>,
    %c0_81 = arith.constant 0 : index
    %c0_82 = arith.constant 0 : index
    %70 = vector.load %arg5[%c0_81, %c0_82] : memref<8x288xf32, #tpu.memory_space<vmem>>, vector<8x288xf32>
    %c0_83 = arith.constant 0 : index
    %c0_84 = arith.constant 0 : index
    %71 = vector.load %arg3[%c0_83, %c0_84] : memref<8x1xf32, #tpu.memory_space<vmem>>, vector<8x1xf32>
    %72 = vector.broadcast %71 : vector<8x1xf32> to vector<8x288xf32>
    %73 = arith.addf %70, %72 : vector<8x288xf32>
    %c0_85 = arith.constant 0 : index
    %c0_86 = arith.constant 0 : index
    %c0_87 = arith.constant 0 : index
    %74 = vector.load %arg4[%c0_85, %c0_86, %c0_87] : memref<1x8x288xf32, #tpu.memory_space<vmem>>, vector<1x8x288xf32>
    %75 = vector.shape_cast %74 : vector<1x8x288xf32> to vector<8x288xf32>
    %76 = vector.shape_cast %73 : vector<8x288xf32> to vector<1x8x288xf32>
    tpu.vector_store %arg4[%c0_85, %c0_86, %c0_87], %76 {strides = array<i32>} : memref<1x8x288xf32, #tpu.memory_space<vmem>>, vector<1x8x288xf32>,
    return
  }
  func.func @transform_0(%arg0: i32) -> (i32, i32, i32) {
    %c0_i32 = arith.constant 0 : i32
    %c0_i32_0 = arith.constant 0 : i32
    %c0_i32_1 = arith.constant 0 : i32
    return %arg0, %c0_i32, %c0_i32_0 : i32, i32, i32
  }
  func.func @transform_1(%arg0: i32) -> (i32, i32, i32) {
    %c0_i32 = arith.constant 0 : i32
    %c0_i32_0 = arith.constant 0 : i32
    %c0_i32_1 = arith.constant 0 : i32
    %c0_i32_2 = arith.constant 0 : i32
    return %c0_i32, %c0_i32_0, %c0_i32_1 : i32, i32, i32
  }
  func.func @transform_2(%arg0: i32) -> (i32, i32) {
    %c0_i32 = arith.constant 0 : i32
    %c0_i32_0 = arith.constant 0 : i32
    %c0_i32_1 = arith.constant 0 : i32
    return %c0_i32, %c0_i32_0 : i32, i32
  }
  func.func @transform_3(%arg0: i32) -> (i32, i32, i32) {
    %c0_i32 = arith.constant 0 : i32
    %c0_i32_0 = arith.constant 0 : i32
    %c0_i32_1 = arith.constant 0 : i32
    return %arg0, %c0_i32, %c0_i32_0 : i32, i32, i32
  }
}

</mosaic_0001>

<bundles_post_ra>
// kernel: tpu_custom_call.1
= control target key start
LH: loop header
LB: loop body
LE: loop exit
PB: predicated region body
PF: predicated region fallthrough
CT: control target
= control target key end

     0   :  { %8 = vsyncpa [#allocation4], 0  ;;  %s2059_s0 = inlined_call_operand.hbm [shape: bf16[16,4,384], index: 0, kind: input, shape index: {}]   ;;  %s2060_s1 = inlined_call_operand.vmem [shape: bf16[9,8,4], index: 1, kind: input, shape index: {}]   ;;  %s2061_s2 = inlined_call_operand.vmem [shape: f32[8,1], index: 2, kind: input, shape index: {}]   ;;  %s2062_s3 = inlined_call_operand.hbm [shape: f32[16,8,288], index: 3, kind: output, shape index: {}]  }
   0x1   :  { %10 = vsyncpa [#allocation4 + $0x1], 0 }
   0x2   :  { %11 = vsyncpa [#allocation5], 0 }
   0x3   :  { %13 = vsyncpa [#allocation5 + $0x1], 0  ;;  %s1770_s12 = smov 0   ;;  %s1772_s13 = smov 0  }
   0x4   :  { %s1774_s14 = smov 0   ;;  %s1776_s15 = smov 0  }
   0x5 LB: > { %s1791_s16 = sadd.s32 4294967295, %s1734_s15   ;;  %s1454_s17 = sadd.s32 4294967294, %s1734_s15   ;;  %s1734_s15 = sphi %s1776_s15, %s2077_s15   ;;  %s1730_s14 = sphi %s1774_s14, %s2076_s14   ;;  %s1726_s13 = sphi %s1772_s13, %s2075_s13   ;;  %s1722_s12 = sphi %s1770_s12, %s2074_s12  }
   0x6   : > { %s1795_s18 = sadd.s32 1, %s1734_s15   ;;  %s26_s19 = sadd.s32 1, %s1730_s14 }
   0x7   : > { %s23_s20 = ssub.s32 %s1734_s15, %s1795_s18  ;;  %p33_p0 = scmp.ne.s32.totalorder %s1730_s14, %s1726_s13 }
   0x8   : > { %p24_p1 = scmp.eq.s32.totalorder %s23_s20, 0  ;;  %p34_p2 = scmp.eq.s32.totalorder %s1734_s15, 0 }
   0x9   : > { %p39_p3 = scmp.ne.s32.totalorder %s1726_s13, %s1722_s12  ;;  %p40_p4 = scmp.eq.s32.totalorder %s1791_s16, 0 }
   0xa   : > { %s1807_s21 = scalar_select %p24_p1, %s1730_s14, %s26_s19  }
   0xb   : > { %p35_p5 = por %p34_p2, %p33_p0  ;;  %p1809_p6 = por %p40_p4, %p39_p3 }
   0xc   : > { %p105_p7 = scmp.eq.s32.totalorder %s1791_s16, 15  ;;  %p111_p8 = scmp.eq.s32.totalorder %s1454_s17, 15 }
   0xd   : > { %s2065_s22 = scalar_select %p1809_p6, 1, 0 }
   0xe   : > { %p1586_p9 = scmp.lt.s32.totalorder %s1734_s15, 16  ;;  %p1815_p10 = por %p105_p7, %p33_p0 }
   0xf   : > { %p1819_p11 = por %p111_p8, %p39_p3  ;;  %s137_s25 = sand.u32 1, %s1730_s14  }
  0x10   : > { %s2066_s23 = scalar_select %p1815_p10, 1, 0 }
  0x11   : > { %s2067_s24 = scalar_select %p1819_p11, 1, 0 }
  0x12   : > { %s1570_s26 = smul.u32 96, %s1734_s15  ;;  %p1830_p12 = pnand %p1586_p9, %p35_p5 }
  0x13   : > { %s1569_s27 = smul.u32 6, %s137_s25  ;;  %s138_s7 = scalar_lea.sflag [#allocation4], %s137_s25 }
  0x14   : > { %s1828_s30 = scalar_lea.hbm %s2059_s0, %s1570_s26  ;;  %p1644_p2 = pneg %p1830_p12 }
  0x15   : > { %s141_s5 = scalar_lea.vmem [#allocation3], %s1569_s27  ;;  %s1642_s8 = scalar_lea.hbm %s1828_s30, 96 }
  0x16   : > { %s149_s6 = sshll.u32 %s141_s5, 4  ;;  %p1643_p1 = scmp.ne.s32.totalorder %s1828_s30, %s1642_s8  ;;  %s150_s6 = int_to_ptr.vmem [resolvable:$true] %s149_s6 }
  0x17   : > { %s1647_s11 = scalar_lea.hbm %s2059_s0, 1536  ;;  %p1648_p5 = scmp.lt.s32.totalorder %s1828_s30, %s2059_s0 }
  0x18   : > { %p1645_p3 = pnand %p1644_p2, %p1643_p1  ;;  %p1649_p7 = scmp.lt.s32.totalorder %s1647_s11, %s1642_s8 }
  0x1a   : > { %p1646_p4 = pneg %p1645_p3  ;;  %p1650_p8 = por %p1649_p7, %p1648_p5 }
  0x1c   : > { %p1651_p9 = pnand %p1650_p8, %p1646_p4 }
  0x1e   : > { %1654 = shalt.err (!%p1651_p9)
}
  0x1f   : > { %s1655_s20 = scalar_lea.vmem %s150_s6, 96  ;;  %s1736_s25 = smov [#allocation3]  }
  0x20   : > { %p1656_p13 = scmp.ne.s32.totalorder %s150_s6, %s1655_s20  ;;  %s1660_s26 = sshll.u32 %s1736_s25, 4  ;;  %s1661_s26 = int_to_ptr.vmem [resolvable:$false] %s1660_s26 }
  0x21   : > { %s1662_s27 = scalar_lea.vmem %s1661_s26, 192  ;;  %p1663_p1 = scmp.lt.s32.totalorder %s150_s6, %s1661_s26 }
  0x22   : > { %p1658_p0 = pnand %p1656_p13, %p1644_p2  ;;  %p1664_p3 = scmp.lt.s32.totalorder %s1662_s27, %s1655_s20 }
  0x24   : > { %p1659_p11 = pneg %p1658_p0  ;;  %p1665_p10 = por %p1664_p3, %p1663_p1 }
  0x26   : > { %p1666_p6 = pnand %p1665_p10, %p1659_p11 }
  0x28   : > { %1669 = shalt.err (!%p1666_p6)
}
  0x29   : > { %1581 = dma.hbm_to_vmem [thread:$0]  (!%p1830_p12), %s1828_s30, 96, %s150_s6, %s138_s7  }
  0x2a   : > { %p2069_p4 = scmp.lt.s32.totalorder %s1734_s15, 17  ;;  %p2070_p5 = scmp.ge.s32.totalorder %s1734_s15, 1 }
  0x2c   : > { %p155_p7 = pnand %p2070_p5, %p2069_p4 }
  0x2d   : > { %s1855_s28 = sand.u32 (!%p155_p7), 1, %s1726_s13   ;;  %p2071_p6 = scmp.ne.s32.totalorder (!%p155_p7), %s2065_s22, 0 }
  0x2e   : > { %158 = sbr.rel (%p155_p7) target bundleno = 468 (0x1d4), region = 32  ;;  %s161_s5 = scalar_lea.sflag (!%p155_p7), [#allocation4], %s1855_s28 }
  0x2f   : > { %s1571_s29 = smul.u32 (!%p155_p7), 6, %s1855_s28 }
  0x31   : > { %s1859_s8 = scalar_lea.vmem (!%p155_p7), [#allocation3], %s1571_s29 }
  0x33   : > { %1713 = dma.done.wait (%p2071_p6), %s161_s5, 96  }
  0x34   : > { %1715 = vsyncadd (%p2071_p6), %s161_s5, 4294967200  ;;  %v195_v0 = vlaneseq  ;;  %v1737_v1 = vmov 1983009808   ;;  %v1738_v4 = vmov 0.0   ;;  %v1739_v5 = vmov 0   ;;  %s1741_s22 = smov 127  }
  0x35   : > { %v193_v2 = vunpack.c.l.s4 %v1737_v1  ;;  %1515 = vmatprep.subr.bf16.mxu1 %v1738_v4  ;;  %253 = vmatprep.mubr.bf16.mxu0 %v1739_v5  ;;  %vm1740_vm0 = vmmov 0   ;;  %v311_v8 = vld [vmem:[%s1859_s8] sm:$0x3f]  ;;  %s1742_s30 = smov 126   ;;  %vm211_vm1 = vcmask 1041408   ;;  %s1743_s4 = smov 110  }
  0x36   : > { %v196_v3 = vshrl.u32 %v195_v0, 7  ;;  %1517 = vmatprep.mubr.msk.bf16.mxu1 %vm1740_vm0, %v1738_v4  ;;  %1632 = vset.pattern.permute.xlu0 %v1739_v5  ;;  %v442_v9 = vld [vmem:[%s1859_s8] sm:$0x3f]  ;;  %v313_v11 = vcombine.high %v311_v8, %v311_v8  ;;  %vm207_vm2 = vcmask 31744   ;;  %s1744_s9 = smov 109   ;;  %s1745_s10 = smov 108  }
  0x37   : > { %v194_v6 = vunpack.c.0.s8 %v193_v2  ;;  %v444_v15 = vcombine.high %v442_v9, %v442_v9  ;;  %v189_v16 = vld [vmem:[%s1859_s8] sm:$0x3f]  ;;  %s1746_s11 = smov 92   ;;  %s1747_s17 = smov 91   ;;  %vm335_vm3 = vcmask 1039360   ;;  %vm466_vm4 = vcmask 1031168  }
  0x38   : > { %v573_v18 = vld [vmem:[%s1859_s8] sm:$0x3f]  ;;  %v191_v21 = vcombine.high %v189_v16, %v189_v16  ;;  %s1748_s19 = smov 90   ;;  %v1462_v61 = vld [vmem:[%s2060_s1 + $0x4] sm:$0xf]  ;;  %vm597_vm5 = vcmask 900096  }
  0x39   : > { %v1870_v7 = vsub.s32 %v194_v6, %v196_v3  ;;  %v575_v23 = vcombine.high %v573_v18, %v573_v18  ;;  %v704_v29 = vld [vmem:[%s1859_s8] sm:$0x3f]  ;;  %vm728_vm6 = vcmask 891904   ;;  %vm859_vm7 = vcmask 883712   ;;  %s1572_s25 = smul.u32 24, %s1855_s28  ;;  %p2072_p11 = scmp.ne.s32.totalorder %s2066_s23, 0 }
  0x3a   : > { %v188_v31 = vld [vmem:[%s2060_s1] sm:$0xf]  ;;  %v706_v33 = vcombine.high %v704_v29, %v704_v29  ;;  %vm990_vm8 = vcmask 752640   ;;  %vm1121_vm9 = vcmask 744448   ;;  %vm1252_vm10 = vcmask 736256   ;;  %s1573_s27 = smul.u32 384, %s1791_s16 }
  0x3b   : > { %v320_v10 = vrot.slane %v311_v8, %v1870_v7  ;;  %v327_v13 = vrot.slane %v313_v11, %v1870_v7  ;;  %v451_v14 = vrot.slane %v442_v9, %v1870_v7  ;;  %v458_v19 = vrot.slane %v444_v15, %v1870_v7  ;;  %v835_v35 = vld [vmem:[%s1859_s8] sm:$0x3f]  ;;  %v1466_v11 = vld [vmem:[%s2060_s1 + $0x8] sm:$0xf]  ;;  %s186_s26 = scalar_lea.vmem [#allocation6], %s1572_s25  ;;  %s1749_s6 = smov [#allocation6]  }
  0x3c   : > { %v198_v20 = vrot.slane %v189_v16, %v1870_v7  ;;  %v582_v22 = vrot.slane %v573_v18, %v1870_v7  ;;  %v205_v26 = vrot.slane %v191_v21, %v1870_v7  ;;  %v589_v30 = vrot.slane %v575_v23, %v1870_v7  ;;  %v966_v40 = vld [vmem:[%s1859_s8] sm:$0x3f]  ;;  %s1384_s29 = sshll.u32 %s186_s26, 4  ;;  %s1674_s7 = sshll.u32 %s1749_s6, 4  ;;  %s1385_s29 = int_to_ptr.vmem [resolvable:$true] %s1384_s29  ;;  %s1675_s7 = int_to_ptr.vmem [resolvable:$false] %s1674_s7 }
  0x3d   : > { %329 = vrot.lane.b32.xlu0 %v320_v10, %s1741_s22  ;;  %v328_v12 = vcombine.high %v320_v10, %v320_v10  ;;  %333 = vrot.lane.b32.xlu1 %v327_v13, %s1741_s22  ;;  %v459_v17 = vcombine.high %v451_v14, %v451_v14  ;;  %v713_v32 = vrot.slane %v704_v29, %v1870_v7  ;;  %v1097_v45 = vld [vmem:[%s1859_s8] sm:$0x3f]  ;;  %vm304_vm11 = vcmask 261120   ;;  %s1676_s16 = scalar_lea.vmem %s1675_s7, 768  ;;  %p1677_p0 = scmp.lt.s32.totalorder %s1385_s29, %s1675_s7 }
  0x3e   : > { %v206_v24 = vcombine.high %v198_v20, %v198_v20  ;;  %v213_v25 = vsel %vm211_vm1, %v198_v20, 0  ;;  %v590_v27 = vcombine.high %v582_v22, %v582_v22  ;;  %v219_v28 = vsel %vm211_vm1, %v205_v26, 0  ;;  %v1228_v50 = vld [vmem:[%s1859_s8] sm:$0x3f] }
  0x3f   : > { %1516 = vmatpush3.bf16.msra.mxu1 %v219_v28  ;;  %v721_v34 = vcombine.high %v713_v32, %v713_v32  ;;  %v720_v36 = vrot.slane %v706_v33, %v1870_v7  ;;  %v844_v37 = vrot.slane %v835_v35, %v1870_v7  ;;  %v837_v38 = vcombine.high %v835_v35, %v835_v35  ;;  %v1357_v56 = vld [vmem:[%s2061_s2] sm:$0xff]  ;;  %v1474_v28 = vld [vmem:[%s2060_s1 + $0x10] sm:$0xf] }
  0x40   : > { %1459 = vmatprep.subr.msk.bf16.mxu0 %vm211_vm1, %v206_v24  ;;  %1521 = vmatprep.subr.bf16.mxu1 %v1738_v4  ;;  %v975_v42 = vrot.slane %v966_v40, %v1870_v7  ;;  %v968_v43 = vcombine.high %v966_v40, %v966_v40  ;;  %v1106_v47 = vrot.slane %v1097_v45, %v1870_v7 }
  0x41   : > { %331 = vrot.lane.b32.xlu0 %v328_v12, %s1741_s22  ;;  %460 = vrot.lane.b32.xlu1 %v451_v14, %s1742_s30  ;;  %v852_v39 = vcombine.high %v844_v37, %v844_v37  ;;  %v851_v41 = vrot.slane %v837_v38, %v1870_v7  ;;  %v1099_v48 = vcombine.high %v1097_v45, %v1097_v45  ;;  %v1478_v38 = vld [vmem:[%s2060_s1 + $0x14] sm:$0xf]  ;;  %s1382_s22 = scalar_lea.hbm %s2062_s3, %s1573_s27 }
  0x42   : > { %236 = vmatpush1.bf16.msra.mxu0 %v213_v25  ;;  %1518 = vmatmul.mubr.msk.bf16.vlgmr.msra.gmra.mxu1 %vm207_vm2, %v188_v31  ;;  %v983_v44 = vcombine.high %v975_v42, %v975_v42  ;;  %v982_v46 = vrot.slane %v968_v43, %v1870_v7  ;;  %v1114_v49 = vcombine.high %v1106_v47, %v1106_v47 }
  0x43   : > { %1523 = vmatprep.mubr.msk.bf16.mxu1 %vm1740_vm0, %v1738_v4  ;;  %v1113_v51 = vrot.slane %v1099_v48, %v1870_v7  ;;  %v1237_v52 = vrot.slane %v1228_v50, %v1870_v7  ;;  %v1230_v53 = vcombine.high %v1228_v50, %v1228_v50 }
  0x45   : > { %462 = vrot.lane.b32.xlu0 %v459_v17, %s1742_s30  ;;  %464 = vrot.lane.b32.xlu1 %v458_v19, %s1742_s30  ;;  %v1245_v54 = vcombine.high %v1237_v52, %v1237_v52  ;;  %v1244_v55 = vrot.slane %v1230_v53, %v1870_v7  ;;  %v1470_v19 = vld [vmem:[%s2060_s1 + $0xc] sm:$0xf]  ;;  %s1370_s30 = scalar_lea.sflag [#allocation5], %s1855_s28 }
  0x46   : > { %1460 = vmatmul.mubr.msk.bf16.vlgmr.msra.gmra.mxu0 %vm207_vm2, %v188_v31 }
  0x47   : > { %382 = vmatprep.mubr.bf16.mxu0 %v1739_v5 }
  0x49   : > { %591 = vrot.lane.b32.xlu0 %v582_v22, %s1743_s4  ;;  %593 = vrot.lane.b32.xlu1 %v590_v27, %s1743_s4 }
  0x4d   : > { %595 = vrot.lane.b32.xlu0 %v589_v30, %s1743_s4  ;;  %722 = vrot.lane.b32.xlu1 %v713_v32, %s1744_s9  ;;  %s1670_s4 = scalar_lea.vmem %s1385_s29, 384 }
  0x4e   : > { %p1671_p10 = scmp.ne.s32.totalorder %s1385_s29, %s1670_s4  ;;  %p1678_p2 = scmp.lt.s32.totalorder %s1676_s16, %s1670_s4 }
  0x50   : > { %p1672_p12 = pnand %p1671_p10, %p2072_p11  ;;  %p1679_p8 = por %p1678_p2, %p1677_p0 }
  0x51   : > { %724 = vrot.lane.b32.xlu0 %v721_v34, %s1744_s9  ;;  %726 = vrot.lane.b32.xlu1 %v720_v36, %s1744_s9 }
  0x52   : > { %p1673_p13 = pneg %p1672_p12 }
  0x54   : > { %p1680_p9 = pnand %p1679_p8, %p1673_p13 }
  0x55   : > { %853 = vrot.lane.b32.xlu0 %v844_v37, %s1745_s10  ;;  %855 = vrot.lane.b32.xlu1 %v852_v39, %s1745_s10 }
  0x59   : > { %857 = vrot.lane.b32.xlu0 %v851_v41, %s1745_s10  ;;  %984 = vrot.lane.b32.xlu1 %v975_v42, %s1746_s11 }
  0x5d   : > { %986 = vrot.lane.b32.xlu0 %v983_v44, %s1746_s11  ;;  %988 = vrot.lane.b32.xlu1 %v982_v46, %s1746_s11 }
  0x61   : > { %1115 = vrot.lane.b32.xlu0 %v1106_v47, %s1747_s17  ;;  %1117 = vrot.lane.b32.xlu1 %v1114_v49, %s1747_s17  ;;  %v1482_v47 = vld [vmem:[%s2060_s1 + $0x18] sm:$0xf] }
  0x65   : > { %1119 = vrot.lane.b32.xlu0 %v1113_v51, %s1747_s17  ;;  %1246 = vrot.lane.b32.xlu1 %v1237_v52, %s1748_s19 }
  0x69   : > { %1248 = vrot.lane.b32.xlu0 %v1245_v54, %s1748_s19  ;;  %1250 = vrot.lane.b32.xlu1 %v1244_v55, %s1748_s19 }
  0x6d   : > { %1360 = vperm.xlu0 %1632, %v1357_v56   ;;  %v1486_v56 = vld [vmem:[%s2060_s1 + $0x1c] sm:$0xf] }
  0xaf   : > { %v330_v57 = vpop.permute.xlu0 %329  ;;  %v334_v58 = vpop.permute.xlu1 %333 }
  0xb0   : > { %v348_v59 = vsel %vm211_vm1, %v334_v58, 0 }
  0xb1   : > { %1522 = vmatpush3.bf16.msra.mxu1 %v348_v59 }
  0xb2   : > { %1527 = vmatprep.subr.bf16.mxu1 %v1738_v4 }
  0xb3   : > { %v332_v60 = vpop.permute.xlu0 %331  ;;  %v461_v1 = vpop.permute.xlu1 %460 }
  0xb4   : > { %v336_v62 = vsel %vm335_vm3, %v330_v57, %v332_v60  ;;  %v337_v63 = vsel %vm335_vm3, %v332_v60, %v334_v58  ;;  %1524 = vmatmul.mubr.msk.bf16.vlgmr.msra.gmra.mxu1 %vm207_vm2, %v1462_v61  ;;  %v1490_v58 = vld [vmem:[%s2060_s1 + $0x20] sm:$0xf] }
  0xb5   : > { %v342_v0 = vsel %vm211_vm1, %v336_v62, 0  ;;  %1463 = vmatprep.subr.msk.bf16.mxu0 %vm211_vm1, %v337_v63  ;;  %1529 = vmatprep.mubr.msk.bf16.mxu1 %vm1740_vm0, %v1738_v4 }
  0xb6   : > { %365 = vmatpush1.bf16.msra.mxu0 %v342_v0 }
  0xb7   : > { %v463_v2 = vpop.permute.xlu0 %462  ;;  %v465_v6 = vpop.permute.xlu1 %464 }
  0xb8   : > { %v467_v3 = vsel %vm466_vm4, %v461_v1, %v463_v2  ;;  %v468_v7 = vsel %vm466_vm4, %v463_v2, %v465_v6  ;;  %v479_v8 = vsel %vm211_vm1, %v465_v6, 0 }
  0xb9   : > { %1464 = vmatmul.mubr.msk.bf16.vlgmr.msra.gmra.mxu0 %vm207_vm2, %v1462_v61  ;;  %v473_v9 = vsel %vm211_vm1, %v467_v3, 0  ;;  %1467 = vmatprep.subr.msk.bf16.mxu0 %vm211_vm1, %v468_v7 }
  0xba   : > { %513 = vmatprep.mubr.bf16.mxu0 %v1739_v5  ;;  %1528 = vmatpush3.bf16.msra.mxu1 %v479_v8 }
  0xbb   : > { %v592_v10 = vpop.permute.xlu0 %591  ;;  %496 = vmatpush1.bf16.msra.mxu0 %v473_v9  ;;  %1533 = vmatprep.subr.bf16.mxu1 %v1738_v4  ;;  %v594_v12 = vpop.permute.xlu1 %593 }
  0xbc   : > { %v598_v13 = vsel %vm597_vm5, %v592_v10, %v594_v12 }
  0xbd   : > { %1530 = vmatmul.mubr.msk.bf16.vlgmr.msra.gmra.mxu1 %vm207_vm2, %v1466_v11  ;;  %v604_v15 = vsel %vm211_vm1, %v598_v13, 0 }
  0xbe   : > { %1535 = vmatprep.mubr.msk.bf16.mxu1 %vm1740_vm0, %v1738_v4 }
  0xbf   : > { %v596_v14 = vpop.permute.xlu0 %595  ;;  %v723_v18 = vpop.permute.xlu1 %722 }
  0xc0   : > { %v610_v16 = vsel %vm211_vm1, %v596_v14, 0  ;;  %v599_v17 = vsel %vm597_vm5, %v594_v12, %v596_v14 }
  0xc1   : > { %1468 = vmatmul.mubr.msk.bf16.vlgmr.msra.gmra.mxu0 %vm207_vm2, %v1466_v11  ;;  %1471 = vmatprep.subr.msk.bf16.mxu0 %vm211_vm1, %v599_v17 }
  0xc2   : > { %627 = vmatpush1.bf16.msra.mxu0 %v604_v15  ;;  %1534 = vmatpush3.bf16.msra.mxu1 %v610_v16 }
  0xc3   : > { %644 = vmatprep.mubr.bf16.mxu0 %v1739_v5  ;;  %v725_v20 = vpop.permute.xlu0 %724  ;;  %1539 = vmatprep.subr.bf16.mxu1 %v1738_v4  ;;  %v727_v22 = vpop.permute.xlu1 %726 }
  0xc4   : > { %v729_v21 = vsel %vm728_vm6, %v723_v18, %v725_v20  ;;  %v730_v23 = vsel %vm728_vm6, %v725_v20, %v727_v22  ;;  %v741_v24 = vsel %vm211_vm1, %v727_v22, 0 }
  0xc5   : > { %1536 = vmatmul.mubr.msk.bf16.vlgmr.msra.gmra.mxu1 %vm207_vm2, %v1470_v19  ;;  %v735_v25 = vsel %vm211_vm1, %v729_v21, 0  ;;  %1475 = vmatprep.subr.msk.bf16.mxu0 %vm211_vm1, %v730_v23 }
  0xc6   : > { %1540 = vmatpush3.bf16.msra.mxu1 %v741_v24  ;;  %1541 = vmatprep.mubr.msk.bf16.mxu1 %vm1740_vm0, %v1738_v4 }
  0xc7   : > { %v854_v26 = vpop.permute.xlu0 %853  ;;  %1545 = vmatprep.subr.bf16.mxu1 %v1738_v4  ;;  %v856_v27 = vpop.permute.xlu1 %855 }
  0xc8   : > { %v860_v31 = vsel %vm859_vm7, %v854_v26, %v856_v27 }
  0xc9   : > { %1472 = vmatmul.mubr.msk.bf16.vlgmr.msra.gmra.mxu0 %vm207_vm2, %v1470_v19  ;;  %v866_v34 = vsel %vm211_vm1, %v860_v31, 0 }
  0xca   : > { %758 = vmatpush1.bf16.msra.mxu0 %v735_v25  ;;  %775 = vmatprep.mubr.bf16.mxu0 %v1739_v5 }
  0xcb   : > { %v858_v29 = vpop.permute.xlu0 %857  ;;  %v985_v33 = vpop.permute.xlu1 %984 }
  0xcc   : > { %v872_v30 = vsel %vm211_vm1, %v858_v29, 0  ;;  %v861_v32 = vsel %vm859_vm7, %v856_v27, %v858_v29 }
  0xcd   : > { %1479 = vmatprep.subr.msk.bf16.mxu0 %vm211_vm1, %v861_v32  ;;  %1542 = vmatmul.mubr.msk.bf16.vlgmr.msra.gmra.mxu1 %vm207_vm2, %v1474_v28 }
  0xce   : > { %1546 = vmatpush3.bf16.msra.mxu1 %v872_v30  ;;  %1547 = vmatprep.mubr.msk.bf16.mxu1 %vm1740_vm0, %v1738_v4 }
  0xcf   : > { %v987_v35 = vpop.permute.xlu0 %986  ;;  %1551 = vmatprep.subr.bf16.mxu1 %v1738_v4  ;;  %v989_v36 = vpop.permute.xlu1 %988 }
  0xd0   : > { %v992_v37 = vsel %vm990_vm8, %v987_v35, %v989_v36  ;;  %v991_v40 = vsel %vm990_vm8, %v985_v33, %v987_v35  ;;  %v1003_v41 = vsel %vm211_vm1, %v989_v36, 0 }
  0xd1   : > { %1476 = vmatmul.mubr.msk.bf16.vlgmr.msra.gmra.mxu0 %vm207_vm2, %v1474_v28  ;;  %v997_v43 = vsel %vm211_vm1, %v991_v40, 0 }
  0xd2   : > { %889 = vmatpush1.bf16.msra.mxu0 %v866_v34  ;;  %906 = vmatprep.mubr.bf16.mxu0 %v1739_v5 }
  0xd3   : > { %1483 = vmatprep.subr.msk.bf16.mxu0 %vm211_vm1, %v992_v37  ;;  %v1116_v39 = vpop.permute.xlu0 %1115  ;;  %v1118_v42 = vpop.permute.xlu1 %1117 }
  0xd4   : > { %v1122_v49 = vsel %vm1121_vm9, %v1116_v39, %v1118_v42 }
  0xd5   : > { %1548 = vmatmul.mubr.msk.bf16.vlgmr.msra.gmra.mxu1 %vm207_vm2, %v1478_v38  ;;  %v1128_v52 = vsel %vm211_vm1, %v1122_v49, 0 }
  0xd6   : > { %1552 = vmatpush3.bf16.msra.mxu1 %v1003_v41  ;;  %1553 = vmatprep.mubr.msk.bf16.mxu1 %vm1740_vm0, %v1738_v4 }
  0xd7   : > { %v1120_v44 = vpop.permute.xlu0 %1119  ;;  %1557 = vmatprep.subr.bf16.mxu1 %v1738_v4  ;;  %v1247_v46 = vpop.permute.xlu1 %1246 }
  0xd8   : > { %v1123_v45 = vsel %vm1121_vm9, %v1118_v42, %v1120_v44  ;;  %v1134_v48 = vsel %vm211_vm1, %v1120_v44, 0 }
  0xd9   : > { %1480 = vmatmul.mubr.msk.bf16.vlgmr.msra.gmra.mxu0 %vm207_vm2, %v1478_v38 }
  0xda   : > { %1020 = vmatpush1.bf16.msra.mxu0 %v997_v43  ;;  %1037 = vmatprep.mubr.bf16.mxu0 %v1739_v5 }
  0xdb   : > { %1487 = vmatprep.subr.msk.bf16.mxu0 %vm211_vm1, %v1123_v45  ;;  %v1249_v50 = vpop.permute.xlu0 %1248  ;;  %v1251_v51 = vpop.permute.xlu1 %1250 }
  0xdc   : > { %v1254_v53 = vsel %vm1252_vm10, %v1249_v50, %v1251_v51  ;;  %v1253_v54 = vsel %vm1252_vm10, %v1247_v46, %v1249_v50  ;;  %v1265_v55 = vsel %vm211_vm1, %v1251_v51, 0 }
  0xdd   : > { %1554 = vmatmul.mubr.msk.bf16.vlgmr.msra.gmra.mxu1 %vm207_vm2, %v1482_v47  ;;  %v1259_v57 = vsel %vm211_vm1, %v1253_v54, 0 }
  0xde   : > { %1558 = vmatpush3.bf16.msra.mxu1 %v1134_v48  ;;  %1559 = vmatprep.mubr.msk.bf16.mxu1 %vm1740_vm0, %v1738_v4 }
  0xdf   : > { %1563 = vmatprep.subr.bf16.mxu1 %v1738_v4 }
  0xe1   : > { %1484 = vmatmul.mubr.msk.bf16.vlgmr.msra.gmra.mxu0 %vm207_vm2, %v1482_v47 }
  0xe2   : > { %1151 = vmatpush1.bf16.msra.mxu0 %v1128_v52  ;;  %1168 = vmatprep.mubr.bf16.mxu0 %v1739_v5 }
  0xe3   : > { %1491 = vmatprep.subr.msk.bf16.mxu0 %vm211_vm1, %v1254_v53 }
  0xe5   : > { %1560 = vmatmul.mubr.msk.bf16.vlgmr.msra.gmra.mxu1 %vm207_vm2, %v1486_v56 }
  0xe6   : > { %1564 = vmatpush3.bf16.msra.mxu1 %v1265_v55  ;;  %1565 = vmatprep.mubr.msk.bf16.mxu1 %vm1740_vm0, %v1738_v4 }
  0xe9   : > { %1488 = vmatmul.mubr.msk.bf16.vlgmr.msra.gmra.mxu0 %vm207_vm2, %v1486_v56 }
  0xea   : > { %1282 = vmatpush1.bf16.msra.mxu0 %v1259_v57  ;;  %1299 = vmatprep.mubr.bf16.mxu0 %v1739_v5 }
  0xed   : > { %1566 = vmatmul.mubr.msk.bf16.vlgmr.msra.gmra.mxu1 %vm207_vm2, %v1490_v58 }
  0xf1   : > { %1492 = vmatmul.mubr.msk.bf16.vlgmr.msra.gmra.mxu0 %vm207_vm2, %v1490_v58 }
 0x102   : > { %v296_v60 = vpop.f32.mrf.mxu1 }
 0x103   : > { %305 = vst.msk [vmem:[#allocation2 + $0x10] sm:$0xff] %vm304_vm11, %v296_v60 }
 0x104   : > { %v1519_v4 = vpop.f32.mrf.mxu1 }
 0x106   : > { %v2008_v59 = vpop.f32.mrf.mxu0  ;;  %v299_v63 = vpop.f32.mrf.mxu1 }
 0x108   : > { %v2010_v61 = vpop.f32.mrf.mxu0  ;;  %v1520_v0 = vpop.f32.mrf.mxu1 }
 0x10a   : > { %v259_v62 = vpop.f32.mrf.mxu0  ;;  %v308_v1 = vld [vmem:[#allocation2 + $0x10] sm:$0xff] }
 0x10c   : > { %v260_v5 = vpop.f32.mrf.mxu0 }
 0x174   : > { %v425_v2 = vpop.f32.mrf.mxu1 }
 0x175   : > { %v433_v3 = vadd.f32 %v425_v2, %v308_v1 }
 0x176   : > { %v1525_v6 = vpop.f32.mrf.mxu1 }
 0x177   : > { %436 = vst.msk [vmem:[#allocation2 + $0x10] sm:$0xff] %vm304_vm11, %v433_v3 }
 0x178   : > { %v428_v8 = vpop.f32.mrf.mxu1 }
 0x179   : > { %v384_v7 = vpop.f32.mrf.mxu0 }
 0x17a   : > { %v1526_v10 = vpop.f32.mrf.mxu1  ;;  %v431_v56 = vadd.f32 %v384_v7, %v2008_v59 }
 0x17b   : > { %v386_v9 = vpop.f32.mrf.mxu0 }
 0x17c   : > { %v432_v60 = vadd.f32 %v386_v9, %v2010_v61 }
 0x17d   : > { %v388_v11 = vpop.f32.mrf.mxu0  ;;  %v556_v12 = vpop.f32.mrf.mxu1 }
 0x17e   : > { %v439_v14 = vld [vmem:[#allocation2 + $0x10] sm:$0xff] }
 0x17f   : > { %v389_v13 = vpop.f32.mrf.mxu0  ;;  %v1531_v15 = vpop.f32.mrf.mxu1  ;;  %v564_v17 = vadd.f32 %v556_v12, %v439_v14 }
 0x181   : > { %v515_v16 = vpop.f32.mrf.mxu0  ;;  %v559_v18 = vpop.f32.mrf.mxu1  ;;  %567 = vst.msk [vmem:[#allocation2 + $0x10] sm:$0xff] %vm304_vm11, %v564_v17 }
 0x182   : > { %v562_v63 = vadd.f32 %v515_v16, %v431_v56 }
 0x183   : > { %v517_v19 = vpop.f32.mrf.mxu0  ;;  %v1532_v20 = vpop.f32.mrf.mxu1 }
 0x184   : > { %v563_v1 = vadd.f32 %v517_v19, %v432_v60 }
 0x185   : > { %v519_v21 = vpop.f32.mrf.mxu0  ;;  %v687_v22 = vpop.f32.mrf.mxu1 }
 0x187   : > { %v520_v23 = vpop.f32.mrf.mxu0  ;;  %v1537_v24 = vpop.f32.mrf.mxu1 }
 0x188   : > { %v570_v26 = vld [vmem:[#allocation2 + $0x10] sm:$0xff]  ;;  %v1361_v23 = vpop.permute.xlu0 %1360 }
 0x189   : > { %v646_v25 = vpop.f32.mrf.mxu0  ;;  %v690_v27 = vpop.f32.mrf.mxu1  ;;  %v695_v29 = vadd.f32 %v687_v22, %v570_v26 }
 0x18a   : > { %v693_v2 = vadd.f32 %v646_v25, %v562_v63 }
 0x18b   : > { %v648_v28 = vpop.f32.mrf.mxu0  ;;  %v1538_v30 = vpop.f32.mrf.mxu1  ;;  %698 = vst.msk [vmem:[#allocation2 + $0x10] sm:$0xff] %vm304_vm11, %v695_v29 }
 0x18c   : > { %v694_v11 = vadd.f32 %v648_v28, %v563_v1 }
 0x18d   : > { %v650_v31 = vpop.f32.mrf.mxu0  ;;  %v818_v32 = vpop.f32.mrf.mxu1 }
 0x18f   : > { %v651_v33 = vpop.f32.mrf.mxu0  ;;  %v1543_v34 = vpop.f32.mrf.mxu1 }
 0x191   : > { %v777_v35 = vpop.f32.mrf.mxu0  ;;  %v821_v36 = vpop.f32.mrf.mxu1 }
 0x192   : > { %v701_v38 = vld [vmem:[#allocation2 + $0x10] sm:$0xff]  ;;  %v824_v12 = vadd.f32 %v777_v35, %v693_v2 }
 0x193   : > { %v779_v37 = vpop.f32.mrf.mxu0  ;;  %v1544_v39 = vpop.f32.mrf.mxu1  ;;  %v826_v40 = vadd.f32 %v818_v32, %v701_v38 }
 0x194   : > { %v825_v7 = vadd.f32 %v779_v37, %v694_v11 }
 0x195   : > { %v781_v41 = vpop.f32.mrf.mxu0  ;;  %v949_v42 = vpop.f32.mrf.mxu1  ;;  %829 = vst.msk [vmem:[#allocation2 + $0x10] sm:$0xff] %vm304_vm11, %v826_v40 }
 0x197   : > { %v782_v43 = vpop.f32.mrf.mxu0  ;;  %v1549_v44 = vpop.f32.mrf.mxu1 }
 0x199   : > { %v908_v45 = vpop.f32.mrf.mxu0  ;;  %v952_v46 = vpop.f32.mrf.mxu1 }
 0x19a   : > { %v955_v61 = vadd.f32 %v908_v45, %v824_v12 }
 0x19b   : > { %v910_v47 = vpop.f32.mrf.mxu0  ;;  %v1550_v48 = vpop.f32.mrf.mxu1 }
 0x19c   : > { %v832_v50 = vld [vmem:[#allocation2 + $0x10] sm:$0xff]  ;;  %v956_v15 = vadd.f32 %v910_v47, %v825_v7 }
 0x19d   : > { %v912_v49 = vpop.f32.mrf.mxu0  ;;  %v1080_v51 = vpop.f32.mrf.mxu1  ;;  %v957_v52 = vadd.f32 %v949_v42, %v832_v50 }
 0x19f   : > { %v913_v53 = vpop.f32.mrf.mxu0  ;;  %v1555_v54 = vpop.f32.mrf.mxu1  ;;  %960 = vst.msk [vmem:[#allocation2 + $0x10] sm:$0xff] %vm304_vm11, %v957_v52 }
 0x1a1   : > { %v1039_v55 = vpop.f32.mrf.mxu0  ;;  %v1083_v57 = vpop.f32.mrf.mxu1 }
 0x1a2   : > { %v1086_v16 = vadd.f32 %v1039_v55, %v955_v61 }
 0x1a3   : > { %v1041_v58 = vpop.f32.mrf.mxu0  ;;  %v1556_v4 = vpop.f32.mrf.mxu1 }
 0x1a4   : > { %v1087_v19 = vadd.f32 %v1041_v58, %v956_v15 }
 0x1a5   : > { %v1043_v62 = vpop.f32.mrf.mxu0  ;;  %v1211_v5 = vpop.f32.mrf.mxu1 }
 0x1a6   : > { %v963_v3 = vld [vmem:[#allocation2 + $0x10] sm:$0xff] }
 0x1a7   : > { %v1044_v0 = vpop.f32.mrf.mxu0  ;;  %v1561_v6 = vpop.f32.mrf.mxu1  ;;  %v1088_v8 = vadd.f32 %v1080_v51, %v963_v3 }
 0x1a9   : > { %v1170_v10 = vpop.f32.mrf.mxu0  ;;  %v1214_v13 = vpop.f32.mrf.mxu1  ;;  %1091 = vst.msk [vmem:[#allocation2 + $0x10] sm:$0xff] %vm304_vm11, %v1088_v8 }
 0x1aa   : > { %v1217_v20 = vadd.f32 %v1170_v10, %v1086_v16 }
 0x1ab   : > { %v1172_v59 = vpop.f32.mrf.mxu0  ;;  %v1562_v9 = vpop.f32.mrf.mxu1 }
 0x1ac   : > { %v1218_v24 = vadd.f32 %v1172_v59, %v1087_v19 }
 0x1ad   : > { %v1174_v14 = vpop.f32.mrf.mxu0  ;;  %v1342_v17 = vpop.f32.mrf.mxu1 }
 0x1af   : > { %v1175_v18 = vpop.f32.mrf.mxu0  ;;  %v1567_v21 = vpop.f32.mrf.mxu1 }
 0x1b0   : > { %v1094_v25 = vld [vmem:[#allocation2 + $0x10] sm:$0xff] }
 0x1b1   : > { %v1301_v22 = vpop.f32.mrf.mxu0  ;;  %v1345_v27 = vpop.f32.mrf.mxu1  ;;  %v1219_v28 = vadd.f32 %v1211_v5, %v1094_v25 }
 0x1b2   : > { %v1348_v26 = vadd.f32 %v1301_v22, %v1217_v20 }
 0x1b3   : > { %v1303_v29 = vpop.f32.mrf.mxu0  ;;  %v1568_v31 = vpop.f32.mrf.mxu1  ;;  %1222 = vst.msk [vmem:[#allocation2 + $0x10] sm:$0xff] %vm304_vm11, %v1219_v28 }
 0x1b4   : > { %v1349_v30 = vadd.f32 %v1303_v29, %v1218_v24  ;;  %v1363_v32 = vadd.f32 %v1361_v23, %v1348_v26 }
 0x1b5   : > { %v1305_v33 = vpop.f32.mrf.mxu0 }
 0x1b6   : > { %v1364_v34 = vadd.f32 %v1361_v23, %v1349_v30  ;;  %1366 = vst [vmem:[%s186_s26] sm:$0xff] %v1363_v32 }
 0x1b7   : > { %v1306_v35 = vpop.f32.mrf.mxu0 }
 0x1b8   : > { %1367 = vst [vmem:[%s186_s26 + $0x8] sm:$0xff] %v1364_v34 }
 0x1ba   : > { %v1225_v36 = vld [vmem:[#allocation2 + $0x10] sm:$0xff] }
 0x1bb   : > { %v1350_v37 = vadd.f32 %v1342_v17, %v1225_v36 }
 0x1bd   : > { %1353 = vst.msk [vmem:[#allocation2 + $0x10] sm:$0xff] %vm304_vm11, %v1350_v37 }
 0x1c4   : > { %v1356_v38 = vld [vmem:[#allocation2 + $0x10] sm:$0xff] }
 0x1c5   : > { %v1365_v39 = vadd.f32 %v1361_v23, %v1356_v38 }
 0x1c7   : > { %1368 = vst.msk [vmem:[%s186_s26 + $0x10] sm:$0xff] %vm304_vm11, %v1365_v39 }
 0x1c8   : > { %1683 = shalt.err (!%p1680_p9)
}
 0x1c9   : > { %s1684_s9 = scalar_lea.hbm %s1382_s22, 384  ;;  %s1688_s11 = scalar_lea.hbm %s2062_s3, 6144 }
 0x1ca   : > { %p1685_p1 = scmp.ne.s32.totalorder %s1382_s22, %s1684_s9  ;;  %p1689_p5 = scmp.lt.s32.totalorder %s1382_s22, %s2062_s3 }
 0x1cb   : > { %p1690_p7 = scmp.lt.s32.totalorder %s1688_s11, %s1684_s9 }
 0x1cc   : > { %p1686_p3 = pnand %p1685_p1, %p2072_p11 }
 0x1cd   : > { %p1691_p6 = por %p1690_p7, %p1689_p5 }
 0x1ce   : > { %p1687_p4 = pneg %p1686_p3 }
 0x1d0   : > { %p1692_p10 = pnand %p1691_p6, %p1687_p4 }
 0x1d2   : > { %1695 = shalt.err (!%p1692_p10)
}
 0x1d3   : > { %1576 = dma.vmem_to_hbm [thread:$0]  (%p2072_p11), %s1385_s29, 384, %s1382_s22, %s1370_s30  }
 0x1d4 PF: > { %p1587_p12 = scmp.ge.s32.totalorder %s1734_s15, 2  ;;  %s1396_s20 = sand.u32 1, %s1722_s12  }
 0x1d5   : > { %p2073_p13 = scmp.ne.s32.totalorder %s2067_s24, 0  ;;  %s1397_s25 = scalar_lea.sflag [#allocation5], %s1396_s20 }
 0x1d7   : > { %p1583_p0 = pnand %p1587_p12, %p2073_p13 }
 0x1d9   : > { %p1584_p2 = pneg %p1583_p0 }
 0x1db   : > { %1717 = dma.done.wait (%p1584_p2), %s1397_s25, 384  }
 0x1dc   : > { %1719 = vsyncadd (%p1584_p2), %s1397_s25, 4294966912  ;;  %p16_p8 = scmp.ge.s32.totalorder %s1795_s18, 18   ;;  %s2074_s12 = smov %s1726_s13 }
 0x1dd   : > { %s2075_s13 = smov %s1730_s14  ;;  %s2076_s14 = smov %s1807_s21 }
 0x1de   : > { %s2077_s15 = smov %s1795_s18  ;;  %18 = sbr.rel (!%p16_p8) target bundleno = 5 (0x5), region = 85 }
 0x1e3   :  { %1402 = vsyncpa [#allocation4], 1 }
 0x1e4   :  { %1404 = vsyncpa [#allocation4 + $0x1], 1 }
 0x1e5   :  { %1405 = vsyncpa [#allocation5], 1 }
 0x1e6   :  { %1407 = vsyncpa [#allocation5 + $0x1], 1 }

</bundles_post_ra>
